<compile_context>
chip_gen: v7x
topology: tpu7x:2x2x1
jax: 0.10.0
libtpu: 0.0.40
codegen_flags: <defaults>
</compile_context>

<pallas_src>
import math
from functools import lru_cache, partial

import jax
import jax.numpy as jnp
from jax.experimental import pallas as pl
from jax.experimental.pallas import tpu as pltpu


def _round_up(n, m):
    return ((n + m - 1) // m) * m


@lru_cache(maxsize=None)
def _vmem_limit_bytes():
    """Per-generation VMEM limit (≈75% of physical, capped at 100 MiB)."""
    try:
        cap = pltpu.get_tpu_info().vmem_capacity_bytes
        return int(min(100 * 1024 * 1024, cap * 3 // 4))
    except Exception:
        return 32 * 1024 * 1024


# --------------------------------------------------------------------------
# Kernel A: fused projections  qh = q@Wq+bq (bf16), kh = k@Wk+bk (bf16),
#                              vp = v@Wv+bv (f32)
# --------------------------------------------------------------------------
def _proj_kernel(q_ref, k_ref, v_ref, wq_ref, wk_ref, wv_ref,
                 bq_ref, bk_ref, bv_ref, qo_ref, ko_ref, vo_ref):
    bf = jnp.bfloat16
    qo_ref[...] = (jnp.dot(q_ref[...].astype(bf), wq_ref[...],
                           preferred_element_type=jnp.float32)
                   + bq_ref[...]).astype(qo_ref.dtype)
    ko_ref[...] = (jnp.dot(k_ref[...].astype(bf), wk_ref[...],
                           preferred_element_type=jnp.float32)
                   + bk_ref[...]).astype(ko_ref.dtype)
    vo_ref[...] = (jnp.dot(v_ref[...].astype(bf), wv_ref[...],
                           preferred_element_type=jnp.float32)
                   + bv_ref[...]).astype(vo_ref.dtype)


def fused_qkv_projection(q, k, v, params, *, d_head, block_rows=512):
    B, L_Q, dm = q.shape
    S, L_V = k.shape[1], v.shape[1]
    Nq, Nk, Nv = B * L_Q, B * S, B * L_V
    R0 = max(Nq, Nk, Nv)
    block_rows = min(block_rows, _round_up(R0, 8))
    R = _round_up(R0, block_rows)
    nb = R // block_rows

    def rows2d(x, n):                       # reshape is free; pad only if needed
        x2d = x.reshape(n, dm)
        return x2d if n == R else jnp.pad(x2d, ((0, R - n), (0, 0)))

    q2d, k2d, v2d = rows2d(q, Nq), rows2d(k, Nk), rows2d(v, Nv)
    wq = params["wq"].astype(jnp.bfloat16)
    wk = params["wk"].astype(jnp.bfloat16)
    wv = params["wv"].astype(jnp.bfloat16)
    bq = params["bq"].reshape(1, dm).astype(jnp.float32)
    bk = params["bk"].reshape(1, dm).astype(jnp.float32)
    bv = params["bv"].reshape(1, d_head).astype(jnp.float32)

    qh2d, kh2d, vp2d = pl.pallas_call(
        _proj_kernel,
        out_shape=(jax.ShapeDtypeStruct((R, dm), jnp.bfloat16),
                   jax.ShapeDtypeStruct((R, dm), jnp.bfloat16),
                   jax.ShapeDtypeStruct((R, d_head), jnp.float32)),
        grid=(nb,),
        in_specs=[
            pl.BlockSpec((block_rows, dm), lambda i: (i, 0)),
            pl.BlockSpec((block_rows, dm), lambda i: (i, 0)),
            pl.BlockSpec((block_rows, dm), lambda i: (i, 0)),
            pl.BlockSpec((dm, dm), lambda i: (0, 0)),
            pl.BlockSpec((dm, dm), lambda i: (0, 0)),
            pl.BlockSpec((dm, d_head), lambda i: (0, 0)),
            pl.BlockSpec((1, dm), lambda i: (0, 0)),
            pl.BlockSpec((1, dm), lambda i: (0, 0)),
            pl.BlockSpec((1, d_head), lambda i: (0, 0)),
        ],
        out_specs=(pl.BlockSpec((block_rows, dm), lambda i: (i, 0)),
                   pl.BlockSpec((block_rows, dm), lambda i: (i, 0)),
                   pl.BlockSpec((block_rows, d_head), lambda i: (i, 0))),
        compiler_params=pltpu.CompilerParams(
            dimension_semantics=("parallel",),
            vmem_limit_bytes=_vmem_limit_bytes()),
    )(q2d, k2d, v2d, wq, wk, wv, bq, bk, bv)
    return qh2d[:Nq], kh2d[:Nk], vp2d[:Nv]


# --------------------------------------------------------------------------
# Kernel B: ProbSparse measure M (all heads per batch step, lane-dense output)
#   M[h, q] = max_{k sampled for q} S[h, q, k] - (sum_k cnt[q,k]*S[h,q,k])/L_K
# Scores are computed transposed (K_h @ Q_h^T) so reductions land as (1, L_Q)
# rows and the (H, L_Q) result is stored lane-dense in a single write.
# --------------------------------------------------------------------------
def _m_kernel(cntT_ref, q_ref, k_ref, m_ref, *, H, inv_LK):
    cntT = cntT_ref[...]                      # (L_K, L_Q) f32 sample counts
    sampled = cntT > 0.0
    rows = []
    for h in range(H):                        # H small & static; leading-dim index
        st = jax.lax.dot_general(             # K_h @ Q_h^T -> (L_K, L_Q)
            k_ref[h], q_ref[h],
            dimension_numbers=(((1,), (1,)), ((), ())),
            preferred_element_type=jnp.float32)
        smax = jnp.max(jnp.where(sampled, st, -jnp.inf), axis=0, keepdims=True)
        ssum = jnp.sum(cntT * st, axis=0, keepdims=True)
        rows.append(smax - ssum * inv_LK)     # (1, L_Q)
    m_ref[...] = jnp.concatenate(rows, axis=0)   # single lane-dense (H, L_Q) store


def prob_sparse_M(cntT, qh, kh):
    # TODO(synk): very long sequences would need a K-tiling grid axis here.
    B, H, L_Q, D = qh.shape
    S = kh.shape[2]
    return pl.pallas_call(
        partial(_m_kernel, H=H, inv_LK=1.0 / S),
        out_shape=jax.ShapeDtypeStruct((B, H, L_Q), jnp.float32),
        grid=(B,),
        in_specs=[
            pl.BlockSpec((S, L_Q), lambda b: (0, 0)),
            pl.BlockSpec((None, H, L_Q, D), lambda b: (b, 0, 0, 0)),
            pl.BlockSpec((None, H, S, D), lambda b: (b, 0, 0, 0)),
        ],
        out_specs=pl.BlockSpec((None, H, L_Q), lambda b: (b, 0, 0)),
        compiler_params=pltpu.CompilerParams(
            dimension_semantics=("parallel",),
            vmem_limit_bytes=_vmem_limit_bytes()),
    )(cntT, qh, kh)


# --------------------------------------------------------------------------
# Kernel C: recompute scores, scale + top-row mask + softmax, mean over heads
#           (accumulated in VMEM scratch across the H grid axis), then
#           out = (attn_mean @ V) @ W_out + b_out   -- all fused.
# Grid: (B, q-tiles, H) with H innermost as the reduction axis.
# --------------------------------------------------------------------------
def _attn_out_kernel(mask_ref, q_ref, k_ref, v_ref, wo_ref, bo_ref,
                     attn_ref, out_ref, acc_ref, *, scale, inv_H):
    h = pl.program_id(2)

    @pl.when(h == 0)
    def _():
        acc_ref[...] = jnp.zeros_like(acc_ref)

    s = jax.lax.dot_general(                              # Q_h @ K_h^T
        q_ref[...], k_ref[...],
        dimension_numbers=(((1,), (1,)), ((), ())),
        preferred_element_type=jnp.float32)               # (tile_q, L_K)
    # rows not in top-u get exactly 0 scores (== torch's zero-init + scatter)
    s = s * (mask_ref[...] * scale)                       # mask (tile_q, 1)
    m = jnp.max(s, axis=-1, keepdims=True)
    e = jnp.exp(s - m)
    r = pl.reciprocal(jnp.sum(e, axis=-1, keepdims=True), approx=True)
    acc_ref[...] += e * r                                 # head-mean accumulator

    @pl.when(h == pl.num_programs(2) - 1)
    def _():
        attn = acc_ref[...] * inv_H
        attn_ref[...] = attn                              # written once per tile
        av = jnp.dot(attn, v_ref[...], preferred_element_type=jnp.float32)
        out_ref[...] = (jnp.dot(av, wo_ref[...],
                                preferred_element_type=jnp.float32)
                        + bo_ref[...])


def attn_softmax_out(row_mask, qh, kh, vp, w_out, b_out, *, scale, tile_q=256):
    B, H, L_Q, D = qh.shape
    S = kh.shape[2]
    d_head = vp.shape[-1]
    d_model = w_out.shape[1]
    tile_q = min(tile_q, L_Q)
    nqb = pl.cdiv(L_Q, tile_q)
    return pl.pallas_call(
        partial(_attn_out_kernel, scale=scale, inv_H=1.0 / H),
        out_shape=(jax.ShapeDtypeStruct((B, L_Q, S), jnp.float32),
                   jax.ShapeDtypeStruct((B, L_Q, d_model), jnp.float32)),
        grid=(B, nqb, H),
        in_specs=[
            pl.BlockSpec((None, None, tile_q, 1), lambda b, qi, h: (b, h, qi, 0)),
            pl.BlockSpec((None, None, tile_q, D), lambda b, qi, h: (b, h, qi, 0)),
            pl.BlockSpec((None, None, S, D), lambda b, qi, h: (b, h, 0, 0)),
            pl.BlockSpec((None, S, d_head), lambda b, qi, h: (b, 0, 0)),
            pl.BlockSpec((d_head, d_model), lambda b, qi, h: (0, 0)),
            pl.BlockSpec((1, d_model), lambda b, qi, h: (0, 0)),
        ],
        out_specs=(pl.BlockSpec((None, tile_q, S), lambda b, qi, h: (b, qi, 0)),
                   pl.BlockSpec((None, tile_q, d_model), lambda b, qi, h: (b, qi, 0))),
        scratch_shapes=[pltpu.VMEM((tile_q, S), jnp.float32)],
        compiler_params=pltpu.CompilerParams(
            dimension_semantics=("parallel", "parallel", "arbitrary"),
            vmem_limit_bytes=_vmem_limit_bytes()),
    )(row_mask, qh, kh, vp, w_out, b_out.reshape(1, d_model))


# --------------------------------------------------------------------------
# Full forward pass of InterpretableAttentionLayer
# --------------------------------------------------------------------------
def interpretable_attention_layer(params, q, k, v, mask, *, n_head, factor=3,
                                  sample_key=None):
    del mask  # accepted for signature parity; mask_flag=False in the module
    B, L_Q, d_model = q.shape
    S = k.shape[1]
    H = n_head
    D = d_model // H
    scale = 1.0 / math.sqrt(D)

    # A) fused projections (bf16 MXU, f32 accumulate, bf16 q/k emitted directly).
    qh2d, kh2d, vp2d = fused_qkv_projection(q, k, v, params, d_head=D)
    qh = qh2d.reshape(B, L_Q, H, D).transpose(0, 2, 1, 3)   # (B,H,L_Q,D) bf16
    kh = kh2d.reshape(B, S, H, D).transpose(0, 2, 1, 3)     # (B,H,S,D)   bf16
    vp = vp2d.reshape(B, v.shape[1], D)                     # (B,S,D)     f32

    U_part = min(factor * int(math.ceil(math.log(S))), S)
    u = min(factor * int(math.ceil(math.log(L_Q))), L_Q)

    # torch.randint(L_K, (L_Q, sample_k)) analogue (shared across batch & heads),
    # turned into a transposed per-row count matrix (handles duplicates exactly).
    index_sample = jax.random.randint(sample_key, (L_Q, U_part), 0, S)
    cntT = jnp.zeros((S, L_Q), jnp.float32).at[
        index_sample, jnp.arange(L_Q)[:, None]].add(1.0)

    # B) sparsity measure M, lane-dense (B, H, L_Q).
    M = prob_sparse_M(cntT, qh, kh)

    # TODO(synk): top-k index selection stays in plain JAX (no Pallas TPU top-k).
    _, top_idx = jax.lax.top_k(M, u)                                   # (B, H, u)
    in_top = jnp.any(
        top_idx[..., :, None] == jnp.arange(L_Q)[None, None, None, :], axis=2)
    row_mask = in_top.astype(jnp.float32)[..., None]                   # (B,H,L_Q,1)

    # C) fused softmax / head-mean / attend / output projection.
    attn_mean, out = attn_softmax_out(row_mask, qh, kh, vp,
                                      params["wo"], params["bo"], scale=scale)
    return out, attn_mean


# --------------------------------------------------------------------------
# Pure-JAX reference (mirrors torch + the kernel's bf16 operand quantization).
# --------------------------------------------------------------------------
def reference(params, q, k, v, *, n_head, factor, sample_key):
    B, L_Q, d_model = q.shape
    S = k.shape[1]
    H = n_head
    D = d_model // H
    bf = jnp.bfloat16

    def lin(x, w, b):
        return jnp.dot(x.astype(bf), w.astype(bf),
                       preferred_element_type=jnp.float32) + b

    qp = lin(q, params["wq"], params["bq"])
    kp = lin(k, params["wk"], params["bk"])
    vp = lin(v, params["wv"], params["bv"])
    qh = qp.reshape(B, L_Q, H, D).transpose(0, 2, 1, 3).astype(bf)
    kh = kp.reshape(B, S, H, D).transpose(0, 2, 1, 3).astype(bf)

    U_part = min(factor * int(math.ceil(math.log(S))), S)
    u = min(factor * int(math.ceil(math.log(L_Q))), L_Q)
    idx_s = jax.random.randint(sample_key, (L_Q, U_part), 0, S)

    Sfull = jnp.einsum("bhqd,bhkd->bhqk", qh, kh,
                       preferred_element_type=jnp.float32)
    QKs = jnp.take_along_axis(Sfull, idx_s[None, None, :, :], axis=-1)
    M = QKs.max(-1) - QKs.sum(-1) / S
    _, top_idx = jax.lax.top_k(M, u)
    in_top = jnp.any(
        top_idx[..., :, None] == jnp.arange(L_Q)[None, None, None, :], axis=2)
    scores = Sfull * (1.0 / math.sqrt(D)) * in_top[..., None].astype(jnp.float32)
    attn = jax.nn.softmax(scores, axis=-1)
    attn_mean = attn.mean(axis=1)
    out = attn_mean @ vp @ params["wo"] + params["bo"]
    return out, attn_mean


def xavier_uniform(key, out_features, in_features):
    a = math.sqrt(6.0 / (in_features + out_features))
    w = jax.random.uniform(key, (out_features, in_features), jnp.float32, -a, a)
    return w.T  # stored pre-transposed as (in, out)


if __name__ == "__main__":
    B, L, d_model, n_head = 2, 32, 32, 4
    d_head = d_model // n_head

    key = jax.random.PRNGKey(0)
    kq, kk, kv, kwq, kwk, kwv, kwo, ksamp = jax.random.split(key, 8)
    q = jax.random.normal(kq, (B, L, d_model), jnp.float32)
    k = jax.random.normal(kk, (B, L, d_model), jnp.float32)
    v = jax.random.normal(kv, (B, L, d_model), jnp.float32)

    params = {
        "wq": xavier_uniform(kwq, d_model, d_model), "bq": jnp.zeros((d_model,), jnp.float32),
        "wk": xavier_uniform(kwk, d_model, d_model), "bk": jnp.zeros((d_model,), jnp.float32),
        "wv": xavier_uniform(kwv, d_head, d_model),  "bv": jnp.zeros((d_head,), jnp.float32),
        "wo": xavier_uniform(kwo, d_model, d_head),  "bo": jnp.zeros((d_model,), jnp.float32),
    }

    out, attn = interpretable_attention_layer(
        params, q, k, v, None, n_head=n_head, factor=3, sample_key=ksamp)
    out, attn = jax.block_until_ready((out, attn))

    ref_out, ref_attn = reference(params, q, k, v, n_head=n_head, factor=3,
                                  sample_key=ksamp)
    # Note: pl.reciprocal(approx=True) adds ~2^-12 relative error to softmax rows.
    assert jnp.allclose(attn, ref_attn, atol=5e-2, rtol=5e-2), "attn mismatch"
    assert jnp.allclose(out, ref_out, atol=5e-2, rtol=5e-2), "out mismatch"

    print("KERNEL_OK")
</pallas_src>

<mosaic_0001>
module attributes {stable_mosaic.version = 11 : i64} {
  func.func @_proj_kernel(%arg0: i32, %arg1: memref<64x32xf32, #tpu.memory_space<vmem>>, %arg2: memref<64x32xf32, #tpu.memory_space<vmem>>, %arg3: memref<64x32xf32, #tpu.memory_space<vmem>>, %arg4: memref<32x32xbf16, #tpu.memory_space<vmem>>, %arg5: memref<32x32xbf16, #tpu.memory_space<vmem>>, %arg6: memref<32x8xbf16, #tpu.memory_space<vmem>>, %arg7: memref<1x32xf32, #tpu.memory_space<vmem>>, %arg8: memref<1x32xf32, #tpu.memory_space<vmem>>, %arg9: memref<1x8xf32, #tpu.memory_space<vmem>>, %arg10: memref<64x32xbf16, #tpu.memory_space<vmem>>, %arg11: memref<64x32xbf16, #tpu.memory_space<vmem>>, %arg12: memref<64x8xf32, #tpu.memory_space<vmem>>) attributes {dimension_semantics = [#tpu.dimension_semantics<parallel>], iteration_bounds = array<i64: 1>, scalar_prefetch = 0 : i64, scratch_operands = 0 : i64, tpu.core_type = #tpu.core_type<tc>, window_params = [{transform_indices = @transform_0, window_bounds = array<i64: 64, 32>}, {transform_indices = @transform_1, window_bounds = array<i64: 64, 32>}, {transform_indices = @transform_2, window_bounds = array<i64: 64, 32>}, {pipeline_mode = #tpu.pipeline_mode<synchronous>, transform_indices = @transform_3, window_bounds = array<i64: 32, 32>}, {pipeline_mode = #tpu.pipeline_mode<synchronous>, transform_indices = @transform_4, window_bounds = array<i64: 32, 32>}, {pipeline_mode = #tpu.pipeline_mode<synchronous>, transform_indices = @transform_5, window_bounds = array<i64: 32, 8>}, {pipeline_mode = #tpu.pipeline_mode<synchronous>, transform_indices = @transform_6, window_bounds = array<i64: 1, 32>}, {pipeline_mode = #tpu.pipeline_mode<synchronous>, transform_indices = @transform_7, window_bounds = array<i64: 1, 32>}, {pipeline_mode = #tpu.pipeline_mode<synchronous>, transform_indices = @transform_8, window_bounds = array<i64: 1, 8>}, {transform_indices = @transform_9, window_bounds = array<i64: 64, 32>}, {transform_indices = @transform_10, window_bounds = array<i64: 64, 32>}, {transform_indices = @transform_11, window_bounds = array<i64: 64, 8>}]} {
    %c0 = arith.constant 0 : index
    %c0_0 = arith.constant 0 : index
    %0 = vector.load %arg1[%c0, %c0_0] : memref<64x32xf32, #tpu.memory_space<vmem>>, vector<64x32xf32>
    %1 = arith.truncf %0 : vector<64x32xf32> to vector<64x32xbf16>
    %c0_1 = arith.constant 0 : index
    %c0_2 = arith.constant 0 : index
    %2 = vector.load %arg4[%c0_1, %c0_2] : memref<32x32xbf16, #tpu.memory_space<vmem>>, vector<32x32xbf16>
    %cst = arith.constant dense<0.000000e+00> : vector<64x32xf32>
    %3 = tpu.matmul %1, %2, %cst {dimension_numbers = #tpu.dot_dimension_numbers<[1], [0], [0], [1], [0, 0, 1, 1], [], []>} : vector<64x32xbf16>, vector<32x32xbf16>, vector<64x32xf32> -> vector<64x32xf32>
    %c0_3 = arith.constant 0 : index
    %c0_4 = arith.constant 0 : index
    %4 = vector.load %arg7[%c0_3, %c0_4] : memref<1x32xf32, #tpu.memory_space<vmem>>, vector<1x32xf32>
    %5 = vector.broadcast %4 : vector<1x32xf32> to vector<64x32xf32>
    %6 = arith.addf %3, %5 : vector<64x32xf32>
    %7 = arith.truncf %6 : vector<64x32xf32> to vector<64x32xbf16>
    %c0_5 = arith.constant 0 : index
    %c0_6 = arith.constant 0 : index
    %8 = vector.load %arg10[%c0_5, %c0_6] : memref<64x32xbf16, #tpu.memory_space<vmem>>, vector<64x32xbf16>
    tpu.vector_store %arg10[%c0_5, %c0_6], %7 {strides = array<i32>} : memref<64x32xbf16, #tpu.memory_space<vmem>>, vector<64x32xbf16>,
    %c0_7 = arith.constant 0 : index
    %c0_8 = arith.constant 0 : index
    %9 = vector.load %arg2[%c0_7, %c0_8] : memref<64x32xf32, #tpu.memory_space<vmem>>, vector<64x32xf32>
    %10 = arith.truncf %9 : vector<64x32xf32> to vector<64x32xbf16>
    %c0_9 = arith.constant 0 : index
    %c0_10 = arith.constant 0 : index
    %11 = vector.load %arg5[%c0_9, %c0_10] : memref<32x32xbf16, #tpu.memory_space<vmem>>, vector<32x32xbf16>
    %cst_11 = arith.constant dense<0.000000e+00> : vector<64x32xf32>
    %12 = tpu.matmul %10, %11, %cst_11 {dimension_numbers = #tpu.dot_dimension_numbers<[1], [0], [0], [1], [0, 0, 1, 1], [], []>} : vector<64x32xbf16>, vector<32x32xbf16>, vector<64x32xf32> -> vector<64x32xf32>
    %c0_12 = arith.constant 0 : index
    %c0_13 = arith.constant 0 : index
    %13 = vector.load %arg8[%c0_12, %c0_13] : memref<1x32xf32, #tpu.memory_space<vmem>>, vector<1x32xf32>
    %14 = vector.broadcast %13 : vector<1x32xf32> to vector<64x32xf32>
    %15 = arith.addf %12, %14 : vector<64x32xf32>
    %16 = arith.truncf %15 : vector<64x32xf32> to vector<64x32xbf16>
    %c0_14 = arith.constant 0 : index
    %c0_15 = arith.constant 0 : index
    %17 = vector.load %arg11[%c0_14, %c0_15] : memref<64x32xbf16, #tpu.memory_space<vmem>>, vector<64x32xbf16>
    tpu.vector_store %arg11[%c0_14, %c0_15], %16 {strides = array<i32>} : memref<64x32xbf16, #tpu.memory_space<vmem>>, vector<64x32xbf16>,
    %c0_16 = arith.constant 0 : index
    %c0_17 = arith.constant 0 : index
    %18 = vector.load %arg3[%c0_16, %c0_17] : memref<64x32xf32, #tpu.memory_space<vmem>>, vector<64x32xf32>
    %19 = arith.truncf %18 : vector<64x32xf32> to vector<64x32xbf16>
    %c0_18 = arith.constant 0 : index
    %c0_19 = arith.constant 0 : index
    %20 = vector.load %arg6[%c0_18, %c0_19] : memref<32x8xbf16, #tpu.memory_space<vmem>>, vector<32x8xbf16>
    %cst_20 = arith.constant dense<0.000000e+00> : vector<64x8xf32>
    %21 = tpu.matmul %19, %20, %cst_20 {dimension_numbers = #tpu.dot_dimension_numbers<[1], [0], [0], [1], [0, 0, 1, 1], [], []>} : vector<64x32xbf16>, vector<32x8xbf16>, vector<64x8xf32> -> vector<64x8xf32>
    %c0_21 = arith.constant 0 : index
    %c0_22 = arith.constant 0 : index
    %22 = vector.load %arg9[%c0_21, %c0_22] : memref<1x8xf32, #tpu.memory_space<vmem>>, vector<1x8xf32>
    %23 = vector.broadcast %22 : vector<1x8xf32> to vector<64x8xf32>
    %24 = arith.addf %21, %23 : vector<64x8xf32>
    %c0_23 = arith.constant 0 : index
    %c0_24 = arith.constant 0 : index
    %25 = vector.load %arg12[%c0_23, %c0_24] : memref<64x8xf32, #tpu.memory_space<vmem>>, vector<64x8xf32>
    tpu.vector_store %arg12[%c0_23, %c0_24], %24 {strides = array<i32>} : memref<64x8xf32, #tpu.memory_space<vmem>>, vector<64x8xf32>,
    return
  }
  func.func @transform_0(%arg0: i32) -> (i32, i32) {
    %c0_i32 = arith.constant 0 : i32
    %c0_i32_0 = arith.constant 0 : i32
    return %arg0, %c0_i32 : i32, i32
  }
  func.func @transform_1(%arg0: i32) -> (i32, i32) {
    %c0_i32 = arith.constant 0 : i32
    %c0_i32_0 = arith.constant 0 : i32
    return %arg0, %c0_i32 : i32, i32
  }
  func.func @transform_2(%arg0: i32) -> (i32, i32) {
    %c0_i32 = arith.constant 0 : i32
    %c0_i32_0 = arith.constant 0 : i32
    return %arg0, %c0_i32 : i32, i32
  }
  func.func @transform_3(%arg0: i32) -> (i32, i32) {
    %c0_i32 = arith.constant 0 : i32
    %c0_i32_0 = arith.constant 0 : i32
    %c0_i32_1 = arith.constant 0 : i32
    return %c0_i32, %c0_i32_0 : i32, i32
  }
  func.func @transform_4(%arg0: i32) -> (i32, i32) {
    %c0_i32 = arith.constant 0 : i32
    %c0_i32_0 = arith.constant 0 : i32
    %c0_i32_1 = arith.constant 0 : i32
    return %c0_i32, %c0_i32_0 : i32, i32
  }
  func.func @transform_5(%arg0: i32) -> (i32, i32) {
    %c0_i32 = arith.constant 0 : i32
    %c0_i32_0 = arith.constant 0 : i32
    %c0_i32_1 = arith.constant 0 : i32
    return %c0_i32, %c0_i32_0 : i32, i32
  }
  func.func @transform_6(%arg0: i32) -> (i32, i32) {
    %c0_i32 = arith.constant 0 : i32
    %c0_i32_0 = arith.constant 0 : i32
    %c0_i32_1 = arith.constant 0 : i32
    return %c0_i32, %c0_i32_0 : i32, i32
  }
  func.func @transform_7(%arg0: i32) -> (i32, i32) {
    %c0_i32 = arith.constant 0 : i32
    %c0_i32_0 = arith.constant 0 : i32
    %c0_i32_1 = arith.constant 0 : i32
    return %c0_i32, %c0_i32_0 : i32, i32
  }
  func.func @transform_8(%arg0: i32) -> (i32, i32) {
    %c0_i32 = arith.constant 0 : i32
    %c0_i32_0 = arith.constant 0 : i32
    %c0_i32_1 = arith.constant 0 : i32
    return %c0_i32, %c0_i32_0 : i32, i32
  }
  func.func @transform_9(%arg0: i32) -> (i32, i32) {
    %c0_i32 = arith.constant 0 : i32
    %c0_i32_0 = arith.constant 0 : i32
    return %arg0, %c0_i32 : i32, i32
  }
  func.func @transform_10(%arg0: i32) -> (i32, i32) {
    %c0_i32 = arith.constant 0 : i32
    %c0_i32_0 = arith.constant 0 : i32
    return %arg0, %c0_i32 : i32, i32
  }
  func.func @transform_11(%arg0: i32) -> (i32, i32) {
    %c0_i32 = arith.constant 0 : i32
    %c0_i32_0 = arith.constant 0 : i32
    return %arg0, %c0_i32 : i32, i32
  }
}

</mosaic_0001>

<bundles_post_ra>
// kernel: tpu_custom_call.1
= control target key start
LH: loop header
LB: loop body
LE: loop exit
PB: predicated region body
PF: predicated region fallthrough
CT: control target
= control target key end

     0   :  { %vm71_vm0 = vcmask 261120   ;;  %vm181_vm1 = vcmask 257024   ;;  %vm454_vm2 = vcmask 64512   ;;  %s859_s3 = inlined_call_operand.vmem [shape: bf16[32,32], index: 3, kind: input, shape index: {}]   ;;  %s860_s0 = inlined_call_operand.vmem [shape: f32[64,32], index: 0, kind: input, shape index: {}]   ;;  %s861_s4 = inlined_call_operand.vmem [shape: bf16[32,32], index: 4, kind: input, shape index: {}]   ;;  %s862_s5 = inlined_call_operand.vmem [shape: bf16[32,8], index: 5, kind: input, shape index: {}]   ;;  %s863_s1 = inlined_call_operand.vmem [shape: f32[64,32], index: 1, kind: input, shape index: {}]   ;;  %s864_s2 = inlined_call_operand.vmem [shape: f32[64,32], index: 2, kind: input, shape index: {}]   ;;  %s865_s6 = inlined_call_operand.vmem [shape: f32[1,32], index: 6, kind: input, shape index: {}]   ;;  %s866_s9 = inlined_call_operand.vmem [shape: bf16[64,32], index: 9, kind: output, shape index: {0}]   ;;  %s867_s7 = inlined_call_operand.vmem [shape: f32[1,32], index: 7, kind: input, shape index: {}]   ;;  %s868_s8 = inlined_call_operand.vmem [shape: f32[1,8], index: 8, kind: input, shape index: {}]   ;;  %s869_s11 = inlined_call_operand.vmem [shape: f32[64,8], index: 11, kind: output, shape index: {2}]   ;;  %s870_s10 = inlined_call_operand.vmem [shape: bf16[64,32], index: 10, kind: output, shape index: {1}]  }
   0x1   :  { %v586_v0 = vld [vmem:[%s859_s3] sm:$0xff]   ;;  %v587_v1 = vld [vmem:[%s859_s3 + $0x8] sm:$0xff]   ;;  %v38_v7 = vld [vmem:[%s860_s0 + $0x10] sm:$0xff] }
   0x2   :  { %546 = vmatprep.subr.bf16.mxu0 %v586_v0  ;;  %582 = vmatprep.subr.bf16.mxu1 %v586_v0  ;;  %v36_v2 = vld [vmem:[%s860_s0] sm:$0xff]  ;;  %v37_v3 = vld [vmem:[%s860_s0 + $0x8] sm:$0xff]  ;;  %v39_v8 = vld [vmem:[%s860_s0 + $0x18] sm:$0xff] }
   0x3   :  { %v40_v4 = vld [vmem:[%s860_s0 + $0x20] sm:$0xff]  ;;  %547 = vmatpush3.bf16.msra.mxu0 %v586_v0  ;;  %584 = vmatpush3.bf16.msra.mxu1 %v586_v0  ;;  %v44_v5 = vpack.c.bf16 %v37_v3, %v36_v2  ;;  %v41_v6 = vld [vmem:[%s860_s0 + $0x28] sm:$0xff]  ;;  %v42_v10 = vld [vmem:[%s860_s0 + $0x30] sm:$0xff]  ;;  %v45_v13 = vpack.c.bf16 %v39_v8, %v38_v7 }
   0x4   :  { %548 = vmatprep.subr.bf16.mxu0 %v587_v1  ;;  %583 = vmatprep.subr.bf16.mxu1 %v587_v1  ;;  %v46_v9 = vpack.c.bf16 %v41_v6, %v40_v4  ;;  %v43_v11 = vld [vmem:[%s860_s0 + $0x38] sm:$0xff]  ;;  %v588_v12 = vld [vmem:[%s861_s4] sm:$0xff]   ;;  %v590_v16 = vld [vmem:[%s861_s4 + $0x8] sm:$0xff]  }
   0x5   :  { %550 = vmatprep.mubr.msk.bf16.mxu0 %vm71_vm0, %v44_v5  ;;  %v47_v14 = vpack.c.bf16 %v43_v11, %v42_v10  ;;  %v589_v15 = vld [vmem:[%s862_s5] sm:$0xff]   ;;  %v591_v17 = vld [vmem:[%s862_s5 + $0x8] sm:$0xff]   ;;  %v192_v24 = vld [vmem:[%s863_s1 + $0x10] sm:$0xff] }
   0x6   :  { %554 = vmatprep.mubr.msk.bf16.mxu1 %vm71_vm0, %v46_v9  ;;  %v190_v18 = vld [vmem:[%s863_s1] sm:$0xff]  ;;  %v191_v19 = vld [vmem:[%s863_s1 + $0x8] sm:$0xff]  ;;  %v193_v25 = vld [vmem:[%s863_s1 + $0x18] sm:$0xff] }
   0x7   :  { %549 = vmatpush3.bf16.msra.mxu0 %v587_v1  ;;  %585 = vmatpush3.bf16.msra.mxu1 %v587_v1  ;;  %v342_v20 = vld [vmem:[%s864_s2] sm:$0xff]  ;;  %v343_v21 = vld [vmem:[%s864_s2 + $0x8] sm:$0xff]  ;;  %v198_v22 = vpack.c.bf16 %v191_v19, %v190_v18  ;;  %v344_v26 = vld [vmem:[%s864_s2 + $0x10] sm:$0xff]  ;;  %v199_v32 = vpack.c.bf16 %v193_v25, %v192_v24 }
   0x8   :  { %558 = vmatprep.subr.bf16.mxu1 %v588_v12  ;;  %570 = vmatprep.subr.bf16.mxu0 %v589_v15  ;;  %v350_v23 = vpack.c.bf16 %v343_v21, %v342_v20  ;;  %v345_v27 = vld [vmem:[%s864_s2 + $0x18] sm:$0xff]  ;;  %v194_v28 = vld [vmem:[%s863_s1 + $0x20] sm:$0xff]  ;;  %v195_v29 = vld [vmem:[%s863_s1 + $0x28] sm:$0xff] }
   0x9   :  { %v346_v30 = vld [vmem:[%s864_s2 + $0x20] sm:$0xff]  ;;  %v347_v31 = vld [vmem:[%s864_s2 + $0x28] sm:$0xff]  ;;  %v351_v33 = vpack.c.bf16 %v345_v27, %v344_v26  ;;  %v200_v34 = vpack.c.bf16 %v195_v29, %v194_v28  ;;  %v196_v36 = vld [vmem:[%s863_s1 + $0x30] sm:$0xff] }
   0xa   :  { %551 = vmatmul.mubr.msk.bf16.vlgmr.msra.gmra.mrb[0].mxu0 %vm71_vm0, %v45_v13  ;;  %555 = vmatmul.mubr.msk.bf16.vlgmr.msra.gmra.mrb[0].mxu1 %vm71_vm0, %v47_v14  ;;  %v352_v35 = vpack.c.bf16 %v347_v31, %v346_v30  ;;  %v197_v37 = vld [vmem:[%s863_s1 + $0x38] sm:$0xff]  ;;  %v348_v38 = vld [vmem:[%s864_s2 + $0x30] sm:$0xff]  ;;  %v475_v42 = vld [vmem:[%s865_s6] ss:$0 sm:$0xff] }
   0xb   :  { %559 = vmatpush3.bf16.msra.mxu1 %v588_v12  ;;  %571 = vmatpush3.bf16.msra.mxu0 %v589_v15  ;;  %v349_v39 = vld [vmem:[%s864_s2 + $0x38] sm:$0xff]  ;;  %v201_v40 = vpack.c.bf16 %v197_v37, %v196_v36  ;;  %v490_v3 = vld [vmem:[%s867_s7] ss:$0 sm:$0xff] }
   0xc   :  { %560 = vmatprep.subr.bf16.mxu1 %v590_v16  ;;  %572 = vmatprep.subr.bf16.mxu0 %v591_v17  ;;  %v353_v41 = vpack.c.bf16 %v349_v39, %v348_v38  ;;  %v505_v4 = vld [vmem:[%s868_s8] ss:$0 sm:$0xff] }
   0xd   :  { %562 = vmatprep.mubr.msk.bf16.mxu1 %vm71_vm0, %v198_v22  ;;  %574 = vmatprep.mubr.msk.bf16.mxu0 %vm71_vm0, %v350_v23 }
   0xf   :  { %561 = vmatpush3.bf16.msra.mxu1 %v590_v16  ;;  %573 = vmatpush3.bf16.msra.mxu0 %v591_v17 }
  0x12   :  { %563 = vmatmul.mubr.msk.bf16.vlgmr.msra.gmra.mrb[4].mxu1 %vm71_vm0, %v199_v32  ;;  %575 = vmatmul.mubr.msk.bf16.vlgmr.msra.gmra.mrb[4].mxu0 %vm71_vm0, %v351_v33 }
  0x13   :  { %566 = vmatprep.mubr.msk.bf16.mxu1 %vm71_vm0, %v200_v34  ;;  %578 = vmatprep.mubr.msk.bf16.mxu0 %vm71_vm0, %v352_v35 }
  0x1a   :  { %567 = vmatmul.mubr.msk.bf16.gmra.mrb[8].mxu1 %vm71_vm0, %v201_v40  ;;  %579 = vmatmul.mubr.msk.bf16.gmra.mrb[8].mxu0 %vm71_vm0, %v353_v41 }
  0xdd   :  { %v552_v43 = vpop.f32.mrb[0].mxu0  ;;  %v556_v44 = vpop.f32.mrb[0].mxu1 }
  0xde   :  { %v127_v45 = vadd.f32 %v552_v43, %v475_v42  ;;  %v143_v46 = vadd.f32 %v556_v44, %v475_v42  ;;  %v118_v47 = vpop.f32.mrb[1].mxu0  ;;  %v134_v48 = vpop.f32.mrb[1].mxu1 }
  0xdf   :  { %v119_v49 = vadd.f32 %v475_v42, %v118_v47  ;;  %v135_v50 = vadd.f32 %v475_v42, %v134_v48  ;;  %v553_v51 = vpop.f32.mrb[2].mxu0  ;;  %v557_v52 = vpop.f32.mrb[2].mxu1 }
  0xe0   :  { %v514_v53 = vpack.c.bf16 %v127_v45, %v127_v45  ;;  %v518_v54 = vpack.c.bf16 %v143_v46, %v143_v46  ;;  %v130_v55 = vadd.f32 %v553_v51, %v475_v42  ;;  %v146_v56 = vadd.f32 %v557_v52, %v475_v42  ;;  %v121_v57 = vpop.f32.mrb[3].mxu0  ;;  %v137_v58 = vpop.f32.mrb[3].mxu1 }
  0xe1   :  { %v512_v59 = vpack.c.bf16 %v119_v49, %v119_v49  ;;  %v516_v60 = vpack.c.bf16 %v135_v50, %v135_v50  ;;  %v122_v61 = vadd.f32 %v475_v42, %v121_v57  ;;  %v138_v62 = vadd.f32 %v475_v42, %v137_v58 }
  0xe2   :  { %184 = vst.msk [vmem:[%s866_s9 + $0x8] sm:$0xf] %vm181_vm1, %v514_v53  ;;  %188 = vst.msk [vmem:[%s866_s9 + $0x18] sm:$0xf] %vm181_vm1, %v518_v54  ;;  %v515_v63 = vpack.c.bf16 %v130_v55, %v130_v55  ;;  %v519_v0 = vpack.c.bf16 %v146_v56, %v146_v56 }
  0xe3   :  { %182 = vst.msk [vmem:[%s866_s9] sm:$0xf] %vm181_vm1, %v512_v59  ;;  %186 = vst.msk [vmem:[%s866_s9 + $0x10] sm:$0xf] %vm181_vm1, %v516_v60  ;;  %v513_v1 = vpack.c.bf16 %v122_v61, %v122_v61  ;;  %v517_v2 = vpack.c.bf16 %v138_v62, %v138_v62 }
  0xe4   :  { %185 = vst.msk [vmem:[%s866_s9 + $0xc] sm:$0xf] %vm181_vm1, %v515_v63  ;;  %189 = vst.msk [vmem:[%s866_s9 + $0x1c] sm:$0xf] %vm181_vm1, %v519_v0 }
  0xe5   :  { %183 = vst.msk [vmem:[%s866_s9 + $0x4] sm:$0xf] %vm181_vm1, %v513_v1  ;;  %187 = vst.msk [vmem:[%s866_s9 + $0x14] sm:$0xf] %vm181_vm1, %v517_v2  ;;  %v564_v5 = vpop.f32.mrb[4].mxu1  ;;  %v576_v6 = vpop.f32.mrb[4].mxu0 }
  0xe6   :  { %v280_v7 = vadd.f32 %v564_v5, %v490_v3  ;;  %v432_v8 = vadd.f32 %v576_v6, %v505_v4  ;;  %v271_v9 = vpop.f32.mrb[5].mxu1  ;;  %v423_v10 = vpop.f32.mrb[5].mxu0 }
  0xe7   :  { %v272_v11 = vadd.f32 %v490_v3, %v271_v9  ;;  %v424_v12 = vadd.f32 %v505_v4, %v423_v10  ;;  %v565_v13 = vpop.f32.mrb[6].mxu1  ;;  %v577_v14 = vpop.f32.mrb[6].mxu0 }
  0xe8   :  { %v522_v15 = vpack.c.bf16 %v280_v7, %v280_v7  ;;  %457 = vst.msk [vmem:[%s869_s11 + $0x10] sm:$0xff] %vm454_vm2, %v432_v8  ;;  %v283_v16 = vadd.f32 %v565_v13, %v490_v3  ;;  %v435_v17 = vadd.f32 %v577_v14, %v505_v4  ;;  %v274_v18 = vpop.f32.mrb[7].mxu1  ;;  %v426_v19 = vpop.f32.mrb[7].mxu0 }
  0xe9   :  { %v520_v20 = vpack.c.bf16 %v272_v11, %v272_v11  ;;  %455 = vst.msk [vmem:[%s869_s11] sm:$0xff] %vm454_vm2, %v424_v12  ;;  %v275_v21 = vadd.f32 %v490_v3, %v274_v18  ;;  %v427_v22 = vadd.f32 %v505_v4, %v426_v19 }
  0xea   :  { %336 = vst.msk [vmem:[%s870_s10 + $0x8] sm:$0xf] %vm181_vm1, %v522_v15  ;;  %v523_v23 = vpack.c.bf16 %v283_v16, %v283_v16 }
  0xeb   :  { %458 = vst.msk [vmem:[%s869_s11 + $0x18] sm:$0xff] %vm454_vm2, %v435_v17  ;;  %v521_v24 = vpack.c.bf16 %v275_v21, %v275_v21  ;;  %456 = vst.msk [vmem:[%s869_s11 + $0x8] sm:$0xff] %vm454_vm2, %v427_v22 }
  0xec   :  { %334 = vst.msk [vmem:[%s870_s10] sm:$0xf] %vm181_vm1, %v520_v20  ;;  %337 = vst.msk [vmem:[%s870_s10 + $0xc] sm:$0xf] %vm181_vm1, %v523_v23 }
  0xed   :  { %335 = vst.msk [vmem:[%s870_s10 + $0x4] sm:$0xf] %vm181_vm1, %v521_v24  ;;  %v568_v25 = vpop.f32.mrb[8].mxu1  ;;  %v580_v26 = vpop.f32.mrb[8].mxu0 }
  0xee   :  { %v296_v27 = vadd.f32 %v568_v25, %v490_v3  ;;  %v448_v28 = vadd.f32 %v580_v26, %v505_v4  ;;  %v287_v29 = vpop.f32.mrb[9].mxu1  ;;  %v439_v30 = vpop.f32.mrb[9].mxu0 }
  0xef   :  { %v288_v31 = vadd.f32 %v490_v3, %v287_v29  ;;  %v440_v32 = vadd.f32 %v505_v4, %v439_v30  ;;  %v569_v33 = vpop.f32.mrb[10].mxu1  ;;  %v581_v34 = vpop.f32.mrb[10].mxu0 }
  0xf0   :  { %v526_v35 = vpack.c.bf16 %v296_v27, %v296_v27  ;;  %461 = vst.msk [vmem:[%s869_s11 + $0x30] sm:$0xff] %vm454_vm2, %v448_v28  ;;  %v299_v36 = vadd.f32 %v569_v33, %v490_v3  ;;  %v451_v37 = vadd.f32 %v581_v34, %v505_v4  ;;  %v290_v38 = vpop.f32.mrb[11].mxu1  ;;  %v442_v39 = vpop.f32.mrb[11].mxu0 }
  0xf1   :  { %v524_v40 = vpack.c.bf16 %v288_v31, %v288_v31  ;;  %459 = vst.msk [vmem:[%s869_s11 + $0x20] sm:$0xff] %vm454_vm2, %v440_v32  ;;  %v291_v41 = vadd.f32 %v490_v3, %v290_v38  ;;  %v443_v42 = vadd.f32 %v505_v4, %v442_v39 }
  0xf2   :  { %340 = vst.msk [vmem:[%s870_s10 + $0x18] sm:$0xf] %vm181_vm1, %v526_v35  ;;  %v527_v43 = vpack.c.bf16 %v299_v36, %v299_v36 }
  0xf3   :  { %462 = vst.msk [vmem:[%s869_s11 + $0x38] sm:$0xff] %vm454_vm2, %v451_v37  ;;  %v525_v44 = vpack.c.bf16 %v291_v41, %v291_v41  ;;  %460 = vst.msk [vmem:[%s869_s11 + $0x28] sm:$0xff] %vm454_vm2, %v443_v42 }
  0xf4   :  { %338 = vst.msk [vmem:[%s870_s10 + $0x10] sm:$0xf] %vm181_vm1, %v524_v40  ;;  %341 = vst.msk [vmem:[%s870_s10 + $0x1c] sm:$0xf] %vm181_vm1, %v527_v43 }
  0xf5   :  { %339 = vst.msk [vmem:[%s870_s10 + $0x14] sm:$0xf] %vm181_vm1, %v525_v44 }

</bundles_post_ra>
